<compile_context>
chip_gen: v6e
topology: v6e:2x2x1
jax: 0.10.0
libtpu: 0.0.40
codegen_flags: <defaults>
</compile_context>

<pallas_src>
import functools

import jax
import jax.numpy as jnp
from jax.experimental import pallas as pl
from jax.experimental.pallas import tpu as pltpu


def _round_up(x, m):
    return (x + m - 1) // m * m


def _temporal_block_kernel(hb_ref, xm_ref, xh_ref, w1_ref, b1_ref, w2_ref,
                           b2_ref, *rest, K, dilation, pad, use_downsample):
    # rest = (bd_ref, out_ref) when use_downsample else (out_ref,)
    del hb_ref  # halo block indices: consumed only by the halo index_map
    if use_downsample:
        bd_ref, out_ref = rest
    else:
        (out_ref,) = rest

    TL = xm_ref.shape[1]              # time-tile rows
    halo = xh_ref.shape[1]            # causal halo rows (>= 2*pad, sublane aligned)
    TLH1 = TL + pad                   # conv1 rows incl. recomputed h1 halo
    off0 = halo - 2 * pad             # >= 0
    Cout_p = b1_ref.shape[1]
    j = pl.program_id(1)              # time-tile index

    xm = xm_ref[0]                                            # (TL, Cin_p)
    # Tile 0's halo DMA is clamped to block 0 (garbage data); it stands in for
    # the causal zero left-padding, so zero it.  Later tiles read real rows.
    xh = xh_ref[0]
    xh = jnp.where(j > 0, xh, jnp.zeros_like(xh))             # (halo, Cin_p)
    window = jnp.concatenate([xh, xm], axis=0)                # (halo+TL, Cin_p)

    # ---- conv1 (+ folded 1x1 downsample): one fused im2col MXU matmul -------
    # TODO(synk): re-benchmark vs K accumulating per-tap matmuls from a VMEM
    # scratch (pl.ds offsets) if the bundle dump shows vld/vst/VALU binding.
    x1 = jnp.concatenate(
        [window[off0 + t * dilation:off0 + t * dilation + TLH1, :]
         for t in range(K)], axis=1)                          # (TLH1, K*Cin_p)
    hw = jnp.dot(x1, w1_ref[...], preferred_element_type=jnp.float32)
    h1 = jnp.maximum(hw[:, :Cout_p] + b1_ref[...], 0.0)       # f32
    # h1-halo rows that fall before t=0 are conv2's zero left-padding -> mask
    row = jax.lax.broadcasted_iota(jnp.int32, (TLH1, 1), 0)   # column mask only
    h1 = jnp.where(row + j * TL >= pad, h1, 0.0)
    h1m = h1.astype(xm.dtype)                                 # MXU operand dtype
    # TODO(synk): dropout1/dropout2 are identity (inference / eval mode).

    # ---- conv2: same fused im2col matmul over the recomputed h1 window ------
    x2 = jnp.concatenate(
        [h1m[t * dilation:t * dilation + TL, :] for t in range(K)], axis=1)
    h2 = jnp.dot(x2, w2_ref[...], preferred_element_type=jnp.float32)
    h2 = jnp.maximum(h2 + b2_ref[...], 0.0)                   # (TL, Cout_p) f32

    # ---- residual + final ReLU ----------------------------------------------
    if use_downsample:
        # last-tap column block of conv1's widened matmul == xm @ wd
        res = hw[pad:, Cout_p:] + bd_ref[...]                 # (TL, Cout_p)
    else:
        res = xm.astype(jnp.float32)
    out_ref[0] = jnp.maximum(h2 + res, 0.0).astype(out_ref.dtype)


def temporal_block_pallas(x, w1, b1, w2, b2, wd, bd, *, kernel_size, dilation,
                          padding, time_tile=512, matmul_dtype=jnp.bfloat16,
                          out_dtype=jnp.bfloat16):
    """x: (B, Cin, L); weights in PyTorch layout: w (Cout, Cin, K), b (Cout,)."""
    B, Cin, L = x.shape
    Cout = w1.shape[0]
    K = kernel_size
    assert padding == (K - 1) * dilation, "causal TCN requires padding=(K-1)*dilation"
    use_downsample = wd is not None
    if not use_downsample:
        assert Cin == Cout, "identity residual requires Cin == Cout"

    LANE = 128
    SUB = 16 if matmul_dtype == jnp.bfloat16 else 8
    Cin_p = _round_up(Cin, LANE)
    Cout_p = _round_up(Cout, LANE)
    halo = max(SUB, _round_up(2 * padding, SUB))
    # Time tile: multiple of `halo` (so the halo is a plain windowed DMA of the
    # input) and of the sublane tile; default 512 amortizes per-step overhead.
    TL = min(_round_up(time_tile, SUB), _round_up(L, SUB))
    TL = _round_up(max(TL, halo), halo)
    L_up = _round_up(L, TL)
    NT = L_up // TL
    halo_per_tl = TL // halo

    # ---- host-side glue: channels-last, lane-dense, time padded to the tile --
    # TODO(synk): keep activations channels-last bf16 across a TemporalBlock
    # stack and do this transpose/pad only at model boundaries.
    x_cl = jnp.transpose(x, (0, 2, 1))                             # (B, L, Cin)
    x_cl = jnp.pad(x_cl, ((0, 0), (0, L_up - L), (0, Cin_p - Cin)))
    xm = x_cl.astype(matmul_dtype)                                 # (B, L_up, Cin_p)
    # Halo block index per time tile: the `halo` rows preceding the tile start,
    # clamped to block 0 for tile 0 (whose halo is zeroed inside the kernel).
    halo_blk = jnp.maximum(
        jnp.arange(NT, dtype=jnp.int32) * halo_per_tl - 1, 0)      # (NT,)

    def conv_weight(w, ci, ci_p):
        wk = jnp.transpose(w, (2, 1, 0))                           # (K, ci, Cout)
        wk = jnp.pad(wk, ((0, 0), (0, ci_p - ci), (0, Cout_p - Cout)))
        return wk.reshape(K * ci_p, Cout_p).astype(matmul_dtype)

    w1f = conv_weight(w1, Cin, Cin_p)                              # (K*Cin_p, Cout_p)
    w2f = conv_weight(w2, Cout, Cout_p)                            # (K*Cout_p, Cout_p)
    b1k = jnp.pad(b1, (0, Cout_p - Cout)).reshape(1, Cout_p).astype(jnp.float32)
    b2k = jnp.pad(b2, (0, Cout_p - Cout)).reshape(1, Cout_p).astype(jnp.float32)

    if use_downsample:
        # Fold the 1x1 downsample into conv1's matmul: Cout_p extra output
        # columns fed only by the last-tap (t = K-1) row block, so column block
        # [Cout_p:) of conv1's im2col matmul equals xm @ wd for non-halo rows.
        wdk = jnp.pad(jnp.transpose(wd[:, :, 0], (1, 0)),
                      ((0, Cin_p - Cin), (0, Cout_p - Cout))).astype(matmul_dtype)
        wd_cols = jnp.zeros((K * Cin_p, Cout_p), matmul_dtype)
        wd_cols = wd_cols.at[(K - 1) * Cin_p:, :].set(wdk)
        w1f = jnp.concatenate([w1f, wd_cols], axis=1)              # (K*Cin_p, 2*Cout_p)
        bdk = jnp.pad(bd, (0, Cout_p - Cout)).reshape(1, Cout_p).astype(jnp.float32)
    N1 = w1f.shape[1]

    in_specs = [
        pl.BlockSpec((1, TL, Cin_p), lambda b, j, hb: (b, j, 0)),
        pl.BlockSpec((1, halo, Cin_p), lambda b, j, hb: (b, hb[j], 0)),
        pl.BlockSpec((K * Cin_p, N1), lambda b, j, hb: (0, 0)),
        pl.BlockSpec((1, Cout_p), lambda b, j, hb: (0, 0)),
        pl.BlockSpec((K * Cout_p, Cout_p), lambda b, j, hb: (0, 0)),
        pl.BlockSpec((1, Cout_p), lambda b, j, hb: (0, 0)),
    ]
    args = [xm, xm, w1f, b1k, w2f, b2k]
    if use_downsample:
        in_specs.append(pl.BlockSpec((1, Cout_p), lambda b, j, hb: (0, 0)))
        args.append(bdk)

    kernel = functools.partial(_temporal_block_kernel, K=K, dilation=dilation,
                               pad=padding, use_downsample=use_downsample)
    out = pl.pallas_call(
        kernel,
        out_shape=jax.ShapeDtypeStruct((B, L_up, Cout_p), out_dtype),
        grid_spec=pltpu.PrefetchScalarGridSpec(
            num_scalar_prefetch=1,
            grid=(B, NT),
            in_specs=in_specs,
            out_specs=pl.BlockSpec((1, TL, Cout_p), lambda b, j, hb: (b, j, 0)),
        ),
        compiler_params=pltpu.CompilerParams(
            dimension_semantics=("parallel", "parallel"),
            vmem_limit_bytes=32 * 1024 * 1024),
    )(halo_blk, *args)
    return jnp.transpose(out[:, :L, :Cout], (0, 2, 1))             # (B, Cout, L)


def apply_weight_norm(v, g):
    # PyTorch weight_norm default dim=0: per-output-channel norm over (Cin, K).
    norm = jnp.sqrt(jnp.sum(v * v, axis=(1, 2), keepdims=True))
    return g.reshape(-1, 1, 1) * v / norm


def temporal_block_ref(x, w1, b1, w2, b2, wd, bd, *, kernel_size, dilation,
                       padding, matmul_dtype=jnp.bfloat16):
    """Pure-JAX reference (NCL layout, independent code path).

    Matmul operands are rounded to `matmul_dtype` (as the kernel feeds the MXU)
    but all math/accumulation is f32; the kernel additionally rounds its final
    output to bf16.
    """
    K = kernel_size

    def rnd(a):
        return a.astype(matmul_dtype).astype(jnp.float32)

    def causal_conv(inp, w, b):
        xp = jnp.pad(inp, ((0, 0), (0, 0), (padding, 0)))
        Bc, _, Lc = inp.shape
        y = jnp.zeros((Bc, w.shape[0], Lc), jnp.float32)
        for t in range(K):
            s = t * dilation
            y = y + jnp.einsum('oc,bcl->bol', w[:, :, t], xp[:, :, s:s + Lc])
        return y + b[None, :, None]

    x_r = rnd(x)
    h1 = jax.nn.relu(causal_conv(x_r, rnd(w1), b1))
    h2 = jax.nn.relu(causal_conv(rnd(h1), rnd(w2), b2))
    if wd is None:
        res = x_r
    else:
        res = jnp.einsum('oc,bcl->bol', rnd(wd)[:, :, 0], x_r) + bd[None, :, None]
    return jax.nn.relu(h2 + res)


if __name__ == "__main__":
    key = jax.random.PRNGKey(0)
    B, Cin, Cout, L = 2, 4, 8, 16
    K, stride, dilation = 3, 1, 4
    padding = (K - 1) * dilation      # = 8, standard causal TCN choice
    dropout = 0.2                     # identity at inference

    ks = jax.random.split(key, 9)
    x = jax.random.normal(ks[0], (B, Cin, L), jnp.float32)

    # conv1 = weight_norm(Conv1d(Cin, Cout, K)); v ~ N(0, 0.01), bias small.
    v1 = 0.01 * jax.random.normal(ks[1], (Cout, Cin, K), jnp.float32)
    g1 = 1.0 + 0.1 * jax.random.normal(ks[2], (Cout,), jnp.float32)
    w1 = apply_weight_norm(v1, g1)
    b1 = 0.01 * jax.random.normal(ks[3], (Cout,), jnp.float32)

    # conv2 = weight_norm(Conv1d(Cout, Cout, K))
    v2 = 0.01 * jax.random.normal(ks[4], (Cout, Cout, K), jnp.float32)
    g2 = 1.0 + 0.1 * jax.random.normal(ks[5], (Cout,), jnp.float32)
    w2 = apply_weight_norm(v2, g2)
    b2 = 0.01 * jax.random.normal(ks[6], (Cout,), jnp.float32)

    # downsample = Conv1d(Cin, Cout, 1) since Cin != Cout
    if Cin != Cout:
        wd = 0.01 * jax.random.normal(ks[7], (Cout, Cin, 1), jnp.float32)
        bd = 0.01 * jax.random.normal(ks[8], (Cout,), jnp.float32)
    else:
        wd, bd = None, None

    out = temporal_block_pallas(x, w1, b1, w2, b2, wd, bd,
                                kernel_size=K, dilation=dilation,
                                padding=padding)
    out = jax.block_until_ready(out)

    ref = temporal_block_ref(x, w1, b1, w2, b2, wd, bd,
                             kernel_size=K, dilation=dilation,
                             padding=padding)
    assert out.shape == (B, Cout, L), out.shape
    out_f32 = out.astype(jnp.float32)
    # bf16 output dtype: one extra rounding of the final ReLU'd activation
    assert jnp.allclose(out_f32, ref, atol=1e-2, rtol=1e-2), \
        float(jnp.max(jnp.abs(out_f32 - ref)))
    print("KERNEL_OK")
</pallas_src>

<mosaic_0001>
module attributes {stable_mosaic.version = 11 : i64} {
  func.func @_temporal_block_kernel(%arg0: i32, %arg1: i32, %arg2: memref<1xi32, #tpu.memory_space<smem>>, %arg3: memref<1x16x128xbf16, #tpu.memory_space<vmem>>, %arg4: memref<1x16x128xbf16, #tpu.memory_space<vmem>>, %arg5: memref<384x256xbf16, #tpu.memory_space<vmem>>, %arg6: memref<1x128xf32, #tpu.memory_space<vmem>>, %arg7: memref<384x128xbf16, #tpu.memory_space<vmem>>, %arg8: memref<1x128xf32, #tpu.memory_space<vmem>>, %arg9: memref<1x128xf32, #tpu.memory_space<vmem>>, %arg10: memref<1x16x128xbf16, #tpu.memory_space<vmem>>) attributes {dimension_semantics = [#tpu.dimension_semantics<parallel>, #tpu.dimension_semantics<parallel>], iteration_bounds = array<i64: 2, 1>, scalar_prefetch = 1 : i64, scratch_operands = 0 : i64, tpu.core_type = #tpu.core_type<tc>, window_params = [{transform_indices = @transform_0, window_bounds = array<i64: 1, 16, 128>}, {transform_indices = @transform_1, window_bounds = array<i64: 1, 16, 128>}, {pipeline_mode = #tpu.pipeline_mode<synchronous>, transform_indices = @transform_2, window_bounds = array<i64: 384, 256>}, {pipeline_mode = #tpu.pipeline_mode<synchronous>, transform_indices = @transform_3, window_bounds = array<i64: 1, 128>}, {pipeline_mode = #tpu.pipeline_mode<synchronous>, transform_indices = @transform_4, window_bounds = array<i64: 384, 128>}, {pipeline_mode = #tpu.pipeline_mode<synchronous>, transform_indices = @transform_5, window_bounds = array<i64: 1, 128>}, {pipeline_mode = #tpu.pipeline_mode<synchronous>, transform_indices = @transform_6, window_bounds = array<i64: 1, 128>}, {transform_indices = @transform_7, window_bounds = array<i64: 1, 16, 128>}]} {
    %c0 = arith.constant 0 : index
    %c0_0 = arith.constant 0 : index
    %c0_1 = arith.constant 0 : index
    %0 = vector.load %arg3[%c0, %c0_0, %c0_1] : memref<1x16x128xbf16, #tpu.memory_space<vmem>>, vector<1x16x128xbf16>
    %1 = vector.shape_cast %0 : vector<1x16x128xbf16> to vector<16x128xbf16>
    %c0_2 = arith.constant 0 : index
    %c0_3 = arith.constant 0 : index
    %c0_4 = arith.constant 0 : index
    %2 = vector.load %arg4[%c0_2, %c0_3, %c0_4] : memref<1x16x128xbf16, #tpu.memory_space<vmem>>, vector<1x16x128xbf16>
    %3 = vector.shape_cast %2 : vector<1x16x128xbf16> to vector<16x128xbf16>
    %c0_i32 = arith.constant 0 : i32
    %4 = arith.cmpi sgt, %arg1, %c0_i32 : i32
    %cst = arith.constant 0.000000e+00 : bf16
    %5 = vector.broadcast %cst : bf16 to vector<16x128xbf16>
    %6 = arith.select %4, %3, %5 : vector<16x128xbf16>
    %7 = tpu.concatenate %6, %1 in 0 : vector<16x128xbf16>, vector<16x128xbf16> -> vector<32x128xbf16>
    %8 = vector.extract_strided_slice %7 {offsets = [0, 0], sizes = [24, 128], strides = [1, 1]} : vector<32x128xbf16> to vector<24x128xbf16>
    %9 = vector.extract_strided_slice %7 {offsets = [4, 0], sizes = [24, 128], strides = [1, 1]} : vector<32x128xbf16> to vector<24x128xbf16>
    %10 = vector.extract_strided_slice %7 {offsets = [8, 0], sizes = [24, 128], strides = [1, 1]} : vector<32x128xbf16> to vector<24x128xbf16>
    %11 = tpu.concatenate %8, %9, %10 in 1 : vector<24x128xbf16>, vector<24x128xbf16>, vector<24x128xbf16> -> vector<24x384xbf16>
    %c0_5 = arith.constant 0 : index
    %c0_6 = arith.constant 0 : index
    %12 = vector.load %arg5[%c0_5, %c0_6] : memref<384x256xbf16, #tpu.memory_space<vmem>>, vector<384x256xbf16>
    %cst_7 = arith.constant dense<0.000000e+00> : vector<24x256xf32>
    %13 = tpu.matmul %11, %12, %cst_7 {dimension_numbers = #tpu.dot_dimension_numbers<[1], [0], [0], [1], [0, 0, 1, 1], [], []>} : vector<24x384xbf16>, vector<384x256xbf16>, vector<24x256xf32> -> vector<24x256xf32>
    %14 = vector.extract_strided_slice %13 {offsets = [0, 0], sizes = [24, 128], strides = [1, 1]} : vector<24x256xf32> to vector<24x128xf32>
    %c0_8 = arith.constant 0 : index
    %c0_9 = arith.constant 0 : index
    %15 = vector.load %arg6[%c0_8, %c0_9] : memref<1x128xf32, #tpu.memory_space<vmem>>, vector<1x128xf32>
    %16 = vector.broadcast %15 : vector<1x128xf32> to vector<24x128xf32>
    %17 = arith.addf %14, %16 : vector<24x128xf32>
    %cst_10 = arith.constant 0.000000e+00 : f32
    %18 = vector.broadcast %cst_10 : f32 to vector<24x128xf32>
    %19 = arith.maximumf %17, %18 : vector<24x128xf32>
    %20 = tpu.iota {dimensions = array<i32: 0>} : vector<24x1xi32>
    %c16_i32 = arith.constant 16 : i32
    %21 = arith.muli %arg1, %c16_i32 : i32
    %22 = vector.broadcast %21 : i32 to vector<24x1xi32>
    %23 = arith.addi %20, %22 : vector<24x1xi32>
    %c8_i32 = arith.constant 8 : i32
    %24 = vector.broadcast %c8_i32 : i32 to vector<24x1xi32>
    %25 = arith.cmpi sge, %23, %24 : vector<24x1xi32>
    %cst_11 = arith.constant 0.000000e+00 : f32
    %26 = vector.shape_cast %25 : vector<24x1xi1> to vector<24x1xi1>
    %27 = vector.broadcast %26 : vector<24x1xi1> to vector<24x128xi1>
    %28 = vector.broadcast %cst_11 : f32 to vector<24x128xf32>
    %29 = arith.select %27, %19, %28 : vector<24x128xi1>, vector<24x128xf32>
    %30 = arith.truncf %29 : vector<24x128xf32> to vector<24x128xbf16>
    %31 = vector.extract_strided_slice %30 {offsets = [0, 0], sizes = [16, 128], strides = [1, 1]} : vector<24x128xbf16> to vector<16x128xbf16>
    %32 = vector.extract_strided_slice %30 {offsets = [4, 0], sizes = [16, 128], strides = [1, 1]} : vector<24x128xbf16> to vector<16x128xbf16>
    %33 = vector.extract_strided_slice %30 {offsets = [8, 0], sizes = [16, 128], strides = [1, 1]} : vector<24x128xbf16> to vector<16x128xbf16>
    %34 = tpu.concatenate %31, %32, %33 in 1 : vector<16x128xbf16>, vector<16x128xbf16>, vector<16x128xbf16> -> vector<16x384xbf16>
    %c0_12 = arith.constant 0 : index
    %c0_13 = arith.constant 0 : index
    %35 = vector.load %arg7[%c0_12, %c0_13] : memref<384x128xbf16, #tpu.memory_space<vmem>>, vector<384x128xbf16>
    %cst_14 = arith.constant dense<0.000000e+00> : vector<16x128xf32>
    %36 = tpu.matmul %34, %35, %cst_14 {dimension_numbers = #tpu.dot_dimension_numbers<[1], [0], [0], [1], [0, 0, 1, 1], [], []>} : vector<16x384xbf16>, vector<384x128xbf16>, vector<16x128xf32> -> vector<16x128xf32>
    %c0_15 = arith.constant 0 : index
    %c0_16 = arith.constant 0 : index
    %37 = vector.load %arg8[%c0_15, %c0_16] : memref<1x128xf32, #tpu.memory_space<vmem>>, vector<1x128xf32>
    %38 = vector.broadcast %37 : vector<1x128xf32> to vector<16x128xf32>
    %39 = arith.addf %36, %38 : vector<16x128xf32>
    %cst_17 = arith.constant 0.000000e+00 : f32
    %40 = vector.broadcast %cst_17 : f32 to vector<16x128xf32>
    %41 = arith.maximumf %39, %40 : vector<16x128xf32>
    %42 = vector.extract_strided_slice %13 {offsets = [8, 128], sizes = [16, 128], strides = [1, 1]} : vector<24x256xf32> to vector<16x128xf32>
    %c0_18 = arith.constant 0 : index
    %c0_19 = arith.constant 0 : index
    %43 = vector.load %arg9[%c0_18, %c0_19] : memref<1x128xf32, #tpu.memory_space<vmem>>, vector<1x128xf32>
    %44 = vector.broadcast %43 : vector<1x128xf32> to vector<16x128xf32>
    %45 = arith.addf %42, %44 : vector<16x128xf32>
    %46 = arith.addf %41, %45 : vector<16x128xf32>
    %cst_20 = arith.constant 0.000000e+00 : f32
    %47 = vector.broadcast %cst_20 : f32 to vector<16x128xf32>
    %48 = arith.maximumf %46, %47 : vector<16x128xf32>
    %49 = arith.truncf %48 : vector<16x128xf32> to vector<16x128xbf16>
    %c0_21 = arith.constant 0 : index
    %c0_22 = arith.constant 0 : index
    %c0_23 = arith.constant 0 : index
    %50 = vector.load %arg10[%c0_21, %c0_22, %c0_23] : memref<1x16x128xbf16, #tpu.memory_space<vmem>>, vector<1x16x128xbf16>
    %51 = vector.shape_cast %50 : vector<1x16x128xbf16> to vector<16x128xbf16>
    %52 = vector.shape_cast %49 : vector<16x128xbf16> to vector<1x16x128xbf16>
    tpu.vector_store %arg10[%c0_21, %c0_22, %c0_23], %52 {strides = array<i32>} : memref<1x16x128xbf16, #tpu.memory_space<vmem>>, vector<1x16x128xbf16>,
    return
  }
  func.func @transform_0(%arg0: i32, %arg1: i32, %arg2: memref<1xi32, #tpu.memory_space<smem>>) -> (i32, i32, i32) {
    %c0_i32 = arith.constant 0 : i32
    %c0_i32_0 = arith.constant 0 : i32
    return %arg0, %arg1, %c0_i32 : i32, i32, i32
  }
  func.func @transform_1(%arg0: i32, %arg1: i32, %arg2: memref<1xi32, #tpu.memory_space<smem>>) -> (i32, i32, i32) {
    %0 = arith.index_cast %arg1 : i32 to index
    %1 = memref.load %arg2[%0] : memref<1xi32, #tpu.memory_space<smem>>
    %c0_i32 = arith.constant 0 : i32
    %c0_i32_0 = arith.constant 0 : i32
    return %arg0, %1, %c0_i32 : i32, i32, i32
  }
  func.func @transform_2(%arg0: i32, %arg1: i32, %arg2: memref<1xi32, #tpu.memory_space<smem>>) -> (i32, i32) {
    %c0_i32 = arith.constant 0 : i32
    %c0_i32_0 = arith.constant 0 : i32
    %c0_i32_1 = arith.constant 0 : i32
    return %c0_i32, %c0_i32_0 : i32, i32
  }
  func.func @transform_3(%arg0: i32, %arg1: i32, %arg2: memref<1xi32, #tpu.memory_space<smem>>) -> (i32, i32) {
    %c0_i32 = arith.constant 0 : i32
    %c0_i32_0 = arith.constant 0 : i32
    %c0_i32_1 = arith.constant 0 : i32
    return %c0_i32, %c0_i32_0 : i32, i32
  }
  func.func @transform_4(%arg0: i32, %arg1: i32, %arg2: memref<1xi32, #tpu.memory_space<smem>>) -> (i32, i32) {
    %c0_i32 = arith.constant 0 : i32
    %c0_i32_0 = arith.constant 0 : i32
    %c0_i32_1 = arith.constant 0 : i32
    return %c0_i32, %c0_i32_0 : i32, i32
  }
  func.func @transform_5(%arg0: i32, %arg1: i32, %arg2: memref<1xi32, #tpu.memory_space<smem>>) -> (i32, i32) {
    %c0_i32 = arith.constant 0 : i32
    %c0_i32_0 = arith.constant 0 : i32
    %c0_i32_1 = arith.constant 0 : i32
    return %c0_i32, %c0_i32_0 : i32, i32
  }
  func.func @transform_6(%arg0: i32, %arg1: i32, %arg2: memref<1xi32, #tpu.memory_space<smem>>) -> (i32, i32) {
    %c0_i32 = arith.constant 0 : i32
    %c0_i32_0 = arith.constant 0 : i32
    %c0_i32_1 = arith.constant 0 : i32
    return %c0_i32, %c0_i32_0 : i32, i32
  }
  func.func @transform_7(%arg0: i32, %arg1: i32, %arg2: memref<1xi32, #tpu.memory_space<smem>>) -> (i32, i32, i32) {
    %c0_i32 = arith.constant 0 : i32
    %c0_i32_0 = arith.constant 0 : i32
    return %arg0, %arg1, %c0_i32 : i32, i32, i32
  }
}

</mosaic_0001>

<bundles_post_ra>
// kernel: tpu_custom_call.1
= control target key start
LH: loop header
LB: loop body
LE: loop exit
PB: predicated region body
PF: predicated region fallthrough
CT: control target
= control target key end

     0   :  { %s2322_s0 = inlined_call_operand.<no memory space> [shape: s32[1], index: 0, kind: input, shape index: {}]   ;;  %s2323_s1 = inlined_call_operand.hbm [shape: bf16[2,16,128], index: 1, kind: input, shape index: {}]   ;;  %s2324_s2 = inlined_call_operand.hbm [shape: bf16[2,16,128], index: 2, kind: input, shape index: {}]   ;;  %s2325_s3 = inlined_call_operand.hbm [shape: bf16[384,256], index: 3, kind: input, shape index: {}]   ;;  %s2326_s4 = inlined_call_operand.vmem [shape: f32[1,128], index: 4, kind: input, shape index: {}]   ;;  %s2327_s5 = inlined_call_operand.hbm [shape: bf16[384,128], index: 5, kind: input, shape index: {}]   ;;  %s2328_s6 = inlined_call_operand.vmem [shape: f32[1,128], index: 6, kind: input, shape index: {}]   ;;  %s2329_s7 = inlined_call_operand.vmem [shape: f32[1,128], index: 7, kind: input, shape index: {}]   ;;  %s2330_s8 = inlined_call_operand.hbm [shape: bf16[2,16,128], index: 8, kind: output, shape index: {}]  }
   0x1   :  { %2348 = sst [smem:[#allocation24_spill]] %s2323_s1 }
   0x2   :  { %2349 = sst [smem:[#allocation25_spill]] %s2325_s3 }
   0x3   :  { %2350 = sst [smem:[#allocation26_spill]] %s2327_s5 }
   0x4   :  { %2351 = sst [smem:[#allocation27_spill]] %s2329_s7 }
   0x5   :  { %2352 = sst [smem:[#allocation28_spill]] %s2330_s8 }
   0x6   :  { %13 = sst [smem:[#allocation3]] %s2322_s0 }
   0x7   :  { %14 = vsyncpa [#allocation5], 0 }
   0x8   :  { %16 = vsyncpa [#allocation5 + $0x1], 0 }
   0x9   :  { %17 = vsyncpa [#allocation8], 0 }
   0xa   :  { %19 = vsyncpa [#allocation8 + $0x1], 0 }
   0xb   :  { %20 = vsyncpa [#allocation11], 0 }
   0xc   :  { %21 = vsyncpa [#allocation6], 0 }
   0xd   :  { %23 = vsyncpa [#allocation6 + $0x1], 0  ;;  %s1989_s29 = smov 0   ;;  %s1991_s30 = smov 0  }
   0xe   :  { %s1993_s9 = smov 0   ;;  %s1995_s10 = smov 0  }
   0xf   :  { %s1997_s11 = smov 0   ;;  %s1999_s12 = smov 0  }
  0x10   :  { %s2001_s0 = smov 0   ;;  %s2003_s13 = smov 0  }
  0x11   :  { %s2005_s14 = smov 0  }
  0x12 LB: > { %2353 = sst [smem:[#allocation18_spill]] %s1905_s10  ;;  %s2033_s15 = sadd.s32 4294967295, %s1925_s14   ;;  %s1925_s14 = sphi %s2005_s14, %s29_s14   ;;  %s1921_s13 = sphi %s2003_s13, %s2399_s13   ;;  %s1917_s0 = sphi %s2001_s0, %s2398_s0   ;;  %s1913_s12 = sphi %s1999_s12, %s2391_s12   ;;  %s1909_s11 = sphi %s1997_s11, %s2397_s11   ;;  %s1905_s10 = sphi %s1995_s10, %s2396_s10   ;;  %s1901_s9 = sphi %s1993_s9, %s2395_s9   ;;  %s1897_s30 = sphi %s1991_s30, %s2394_s30   ;;  %s1893_s29 = sphi %s1989_s29, %s2393_s29  }
  0x13   : > { %2354 = sst [smem:[#allocation19_spill]] %s1913_s12  ;;  %s1321_s16 = sadd.s32 4294967294, %s1925_s14  }
  0x14   : > { %p63_p0 = scmp.ne.s32.totalorder %s1909_s11, %s1905_s10  ;;  %p2331_p1 = scmp.eq.s32.totalorder %s2033_s15, 0 }
  0x15   : > { %p93_p2 = scmp.ne.s32.totalorder %s1897_s30, %s1893_s29  ;;  %p230_p5 = scmp.eq.s32.totalorder %s1321_s16, 1 }
  0x16   : > { %p2043_p4 = por %p2331_p1, %p63_p0  ;;  %p1322_p7 = scmp.ge.s32.totalorder %s1925_s14, 1 }
  0x17   : > { %p2049_p6 = por %p93_p2, %p2331_p1  ;;  %p2054_p8 = por %p230_p5, %p63_p0 }
  0x18   : > { %s2355_s17 = scalar_select %p2043_p4, 1, 0 }
  0x19   : > { %s2356_s18 = scalar_select %p2049_p6, 1, 0 }
  0x1a   : > { %s2357_s19 = scalar_select %p2054_p8, 1, 0 }
  0x1b   : > { %p237_p9 = scmp.lt.s32.totalorder %s1925_s14, 3  ;;  %s1927_s21 = smov [#allocation9]  }
  0x1c   : > { %2358 = sst [smem:[#allocation20_spill]] %s2357_s19  ;;  %s249_s22 = sshll.u32 %s1927_s21, 4  ;;  %s250_s22 = int_to_ptr.vmem [resolvable:$true] %s249_s22 }
  0x1d   : > { %p2059_p10 = pnand %p1322_p7, %p237_p9  ;;  %s1928_s24 = smov [#allocation10]  }
  0x1e   : > { %s265_s25 = sshll.u32 %s1928_s24, 4  ;;  %s1712_s26 = scalar_lea.vmem %s250_s22, 6144  ;;  %s266_s25 = int_to_ptr.vmem [resolvable:$true] %s265_s25 }
  0x1f   : > { %s2359_s20 = scalar_select %p2059_p10, 1, 0 }
  0x20   : > { %p1497_p11 = pneg %p2059_p10  ;;  %p1713_p2 = scmp.ne.s32.totalorder %s250_s22, %s1712_s26 }
  0x21   : > { %p1720_p9 = scmp.lt.s32.totalorder %s250_s22, %s250_s22  ;;  %p1721_p12 = scmp.lt.s32.totalorder %s1712_s26, %s1712_s26 }
  0x22   : > { %p2068_p13 = pnand %p1497_p11, %p2331_p1 }
  0x23   : > { %p1722_p3 = por %p1721_p12, %p1720_p9 }
  0x24   : > { %p1703_p0 = pneg %p2068_p13 }
  0x26   : > { %p1715_p5 = pnand %p1713_p2, %p1703_p0 }
  0x28   : > { %p1716_p7 = pneg %p1715_p5 }
  0x2a   : > { %p1723_p11 = pnand %p1722_p3, %p1716_p7 }
  0x2c   : > { %1726 = shalt.err (!%p1723_p11)
}
  0x2d   : > { %s1929_s27 = smov 128   ;;  %s1930_s28 = smov 8  }
  0x2e   : > { %s2361_s3 = sld [smem:[#allocation25_spill]]  ;;  %s1738_s21 = scalar_lea.vmem %s266_s25, 3072 }
  0x2f   : > { %p1739_p1 = scmp.ne.s32.totalorder %s266_s25, %s1738_s21  ;;  %p1746_p8 = scmp.lt.s32.totalorder %s266_s25, %s266_s25 }
  0x30   : > { %p1747_p6 = scmp.lt.s32.totalorder %s1738_s21, %s1738_s21 }
  0x31   : > { %p1741_p2 = pnand %p1739_p1, %p1703_p0 }
  0x32   : > { %p1748_p12 = por %p1747_p6, %p1746_p8 }
  0x33   : > { %p1742_p5 = pneg %p1741_p2 }
  0x34   : > { %1500 = dma.hbm_to_vmem [thread:$0]  (!%p2068_p13), %s2361_s3, 6144, %s250_s22, [#allocation8], %s1929_s27, %s1929_s27, %s1930_s28  }
  0x35   : > { %p1749_p3 = pnand %p1748_p12, %p1742_p5 }
  0x37   : > { %1752 = shalt.err (!%p1749_p3)
}
  0x38   : > { %s2333_s24 = smov 64   ;;  %s2335_s22 = smov 4  }
  0x39   : > { %s2362_s5 = sld [smem:[#allocation26_spill]]  ;;  %s41_s28 = sadd.s32 1, %s1921_s13 }
  0x3a   : > { %s50_s29 = sadd.s32 1, %s1913_s12  ;;  %p43_p1 = scmp.ge.s32.totalorder %s41_s28, 2 }
  0x3b   : > { %p57_p6 = scmp.ne.s32.totalorder %s1913_s12, %s1909_s11  ;;  %p2343_p8 = scmp.eq.s32.totalorder %s1925_s14, 0 }
  0x3c   : > { %s2098_s16 = sld [smem:[#allocation3]]  ;;  %s2401_s28 = smov (%p43_p1, %s41_s28), 0 }
  0x3d   : > { %2363 = sst [smem:[#allocation21_spill]] %s2401_s28  ;;  %p59_p0 = por %p2343_p8, %p57_p6 }
  0x3e   : > { %p2364_p7 = scmp.eq.s32.totalorder %s2033_s15, 1  ;;  %s285_s26 = sand.u32 1, %s1913_s12  }
  0x3f   : > { %1503 = dma.hbm_to_vmem [thread:$0]  (!%p2068_p13), %s2362_s5, 3072, %s266_s25, [#allocation11], %s2333_s24, %s2333_s24, %s2335_s22  }
  0x40   : > { %p2106_p9 = por %p2364_p7, %p57_p6  ;;  %s45_s25 = ssub.s32 %s1921_s13, %s2401_s28 }
  0x41   : > { %p1517_p13 = scmp.lt.s32.totalorder %s1925_s14, 2  ;;  %p2113_p11 = scmp.eq.s32.totalorder %s45_s25, 0 }
  0x42   : > { %s2365_s23 = scalar_select %p2106_p9, 1, 0 }
  0x43   : > { %s1326_s27 = sshll.u32 %s285_s26, 3  ;;  %s1423_s22 = sshll.u32 %s1921_s13, 7 }
  0x44   : > { %2366 = sst [smem:[#allocation22_spill]] %s2365_s23  ;;  %s289_s10 = scalar_lea.vmem [#allocation4], %s1326_s27 }
  0x45   : > { %s2121_s24 = scalar_select %p2113_p11, %s1913_s12, %s50_s29  }
  0x46   : > { %s2369_s1 = sld [smem:[#allocation24_spill]]  ;;  %s298_s8 = sshll.u32 %s289_s10, 4  ;;  %s299_s8 = int_to_ptr.vmem [resolvable:$true] %s298_s8 }
  0x47   : > { %2368 = sst [smem:[#allocation23_spill]] %s2121_s24  ;;  %p2129_p2 = pnand %p1517_p13, %p59_p0 }
  0x48   : > { %s286_s25 = scalar_lea.sflag [#allocation5], %s285_s26  ;;  %s1766_s23 = scalar_lea.vmem %s299_s8, 128 }
  0x49   : > { %p1755_p5 = pneg %p2129_p2  ;;  %p1767_p12 = scmp.ne.s32.totalorder %s299_s8, %s1766_s23 }
  0x4a   : > { %s1933_s29 = smov [#allocation4]  }
  0x4b   : > { %p1769_p3 = pnand %p1767_p12, %p1755_p5  ;;  %s1771_s24 = sshll.u32 %s1933_s29, 4  ;;  %s1772_s24 = int_to_ptr.vmem [resolvable:$false] %s1771_s24 }
  0x4c   : > { %s297_s19 = scalar_lea.hbm %s2369_s1, %s1423_s22  ;;  %s1773_s3 = scalar_lea.vmem %s1772_s24, 256 }
  0x4d   : > { %p1770_p1 = pneg %p1769_p3  ;;  %p1774_p6 = scmp.lt.s32.totalorder %s299_s8, %s1772_s24 }
  0x4e   : > { %p1775_p7 = scmp.lt.s32.totalorder %s1773_s3, %s1766_s23 }
  0x50   : > { %p1776_p8 = por %p1775_p7, %p1774_p6 }
  0x52   : > { %p1777_p0 = pnand %p1776_p8, %p1770_p1 }
  0x54   : > { %1780 = shalt.err (!%p1777_p0)
}
  0x55   : > { %s2371_s5 = smov 4   ;;  %s2372_s10 = smov 64  }
  0x56   : > { %1507 = dma.hbm_to_vmem [thread:$0]  (!%p2129_p2), %s297_s19, 128, %s299_s8, %s286_s25, %s2372_s10, %s2372_s10, %s2371_s5  }
  0x57   : > { %s80_s24 = sadd.s32 1, %s1901_s9  ;;  %p87_p8 = scmp.ne.s32.totalorder %s1901_s9, %s1897_s30 }
  0x58   : > { %s2146_s22 = scalar_select %p2113_p11, %s1901_s9, %s80_s24  }
  0x59   : > { %p2373_p5 = scmp.eq.s32.totalorder %s1925_s14, 0  ;;  %s308_s28 = sand.u32 1, %s1925_s14  }
  0x5a   : > { %s310_s23 = sand.u32 1, %s1901_s9   ;;  %s1330_s27 = sshll.u32 %s2098_s16, 1 }
  0x5b   : > { %p89_p12 = por %p87_p8, %p2373_p5  ;;  %s1329_s26 = sshll.u32 %s310_s23, 3 }
  0x5c   : > { %s1331_s29 = sshll.u32 %s1921_s13, 1  ;;  %s312_s1 = scalar_lea.vmem [#allocation7], %s1329_s26 }
  0x5d   : > { %s319_s3 = sadd.s32 %s1331_s29, %s1330_s27  ;;  %s322_s12 = sshll.u32 %s312_s1, 4  ;;  %s2154_s12 = int_to_ptr.vmem [resolvable:$true] %s322_s12 }
  0x5e   : > { %s1332_s7 = sshll.u32 %s319_s3, 6  ;;  %p2163_p11 = pnand %p1517_p13, %p89_p12 }
  0x5f   : > { %s2159_s25 = scalar_lea.hbm %s2324_s2, %s1332_s7  ;;  %s2167_s16 = scalar_lea.sflag [#allocation8], %s308_s28 }
  0x60   : > { %s1781_s1 = scalar_lea.hbm %s2159_s25, 128  ;;  %p1783_p3 = pneg %p2163_p11 }
  0x61   : > { %p1782_p2 = scmp.ne.s32.totalorder %s2159_s25, %s1781_s1  ;;  %s1786_s23 = scalar_lea.hbm %s2324_s2, 256 }
  0x62   : > { %p1787_p13 = scmp.lt.s32.totalorder %s2159_s25, %s2324_s2  ;;  %p1788_p7 = scmp.lt.s32.totalorder %s1786_s23, %s1781_s1 }
  0x63   : > { %p1784_p1 = pnand %p1783_p3, %p1782_p2 }
  0x64   : > { %p1789_p0 = por %p1788_p7, %p1787_p13 }
  0x65   : > { %p1785_p6 = pneg %p1784_p1 }
  0x67   : > { %p1790_p8 = pnand %p1789_p0, %p1785_p6 }
  0x69   : > { %1793 = shalt.err (!%p1790_p8)
}
  0x6a   : > { %s1794_s28 = scalar_lea.vmem %s2154_s12, 128  ;;  %s1934_s29 = smov [#allocation7]  }
  0x6b   : > { %p1795_p5 = scmp.ne.s32.totalorder %s2154_s12, %s1794_s28  ;;  %s1799_s3 = sshll.u32 %s1934_s29, 4  ;;  %s1800_s3 = int_to_ptr.vmem [resolvable:$false] %s1799_s3 }
  0x6c   : > { %s1801_s8 = scalar_lea.vmem %s1800_s3, 256  ;;  %p1802_p1 = scmp.lt.s32.totalorder %s2154_s12, %s1800_s3 }
  0x6d   : > { %p1797_p12 = pnand %p1795_p5, %p1783_p3  ;;  %p1803_p9 = scmp.lt.s32.totalorder %s1801_s8, %s1794_s28 }
  0x6f   : > { %p1798_p2 = pneg %p1797_p12  ;;  %p1804_p4 = por %p1803_p9, %p1802_p1 }
  0x71   : > { %p1805_p10 = pnand %p1804_p4, %p1798_p2 }
  0x73   : > { %1808 = shalt.err (!%p1805_p10)
}
  0x74   : > { %1510 = dma.hbm_to_vmem [thread:$0]  (!%p2163_p11), %s2159_s25, 128, %s2154_s12, %s2167_s16, %s2372_s10, %s2372_s10, %s2371_s5  }
  0x75   : > { %p2375_p3 = scmp.ne.s32.totalorder %s2359_s20, 0 }
  0x76   : > { %s2194_s19 = sand.u32 (!%p2375_p3), 1, %s1909_s11   ;;  %p2376_p4 = scmp.ne.s32.totalorder (!%p2375_p3), %s2355_s17, 0 }
  0x77   : > { %334 = sbr.rel (%p2375_p3) target bundleno = 639 (0x27f), region = 48  ;;  %s1334_s1 = sshll.u32 (!%p2375_p3), %s2194_s19, 3 }
  0x78   : > { %s337_s24 = scalar_lea.sflag (!%p2375_p3), [#allocation5], %s2194_s19  ;;  %s2200_s21 = scalar_lea.vmem (!%p2375_p3), [#allocation4], %s1334_s1 }
  0x7c   : > { %1872 = dma.done.wait (%p2376_p4), %s337_s24, 128  }
  0x7d   : > { %1874 = vsyncadd (%p2376_p4), %s337_s24, 4294967168  ;;  %s345_s12 = sand.u32 1, %s2033_s15   ;;  %p2377_p10 = scmp.ne.s32.totalorder %s2356_s18, 0 }
  0x7e   : > { %s346_s20 = scalar_lea.sflag [#allocation8], %s345_s12 }
  0x7f   : > { %1876 = dma.done.wait (%p2377_p10), %s346_s20, 128  }
  0x80   : > { %1878 = vsyncadd (%p2377_p10), %s346_s20, 4294967168  ;;  %p2378_p9 = scmp.eq.s32.totalorder %s2033_s15, 0 }
  0x82   : > { %1880 = dma.done.wait (%p2378_p9), [#allocation8], 6144   ;;  %p2379_p11 = pmov %p2378_p9 }
  0x83   : > { %p2380_p6 = pmov %p2378_p9 }
  0x84   : > { %1882 = vsyncadd (%p2379_p11), [#allocation8], 4294961152 }
  0x85   : > { %1884 = dma.done.wait (%p2380_p6), [#allocation11], 3072   ;;  %p2381_p13 = pmov %p2380_p6 }
  0x86   : > { %v1935_v0 = vmov 0   ;;  %v1604_v1 = vld [vmem:[#allocation9 + $0x74] ss:$8 sps:$4 sm:$0xff]   ;;  %v1606_v2 = vld [vmem:[#allocation9 + $0x70] ss:$8 sps:$4 sm:$0xff]   ;;  %v2225_v33 = vld [vmem:[%s2200_s21] sm:$0xff]  }
  0x87   : > { %1886 = vsyncadd (%p2381_p13), [#allocation11], 4294964224  ;;  %802 = vmatprep.mubr.bf16.mxu1 %v1935_v0  ;;  %720 = vmatprep.subr.bf16.mxu0 %v1604_v1  ;;  %v1607_v3 = vld [vmem:[#allocation9 + $0x64] ss:$8 sps:$4 sm:$0xff]   ;;  %v1609_v4 = vld [vmem:[#allocation9 + $0x60] ss:$8 sps:$4 sm:$0xff]   ;;  %v2222_v30 = vcombine.low %v1935_v0, %v1935_v0 }
  0x88   : > { %721 = vmatpush1.bf16.msra.mxu0 %v1606_v2  ;;  %v1610_v5 = vld [vmem:[#allocation9 + $0x54] ss:$8 sps:$4 sm:$0xff]   ;;  %v1612_v6 = vld [vmem:[#allocation9 + $0x50] ss:$8 sps:$4 sm:$0xff]   ;;  %v1613_v7 = vld [vmem:[#allocation9 + $0x44] ss:$8 sps:$4 sm:$0xff]  }
  0x89   : > { %722 = vmatprep.subr.bf16.mxu0 %v1607_v3  ;;  %v1625_v8 = vld [vmem:[#allocation9 + $0x174] ss:$8 sps:$4 sm:$0xff]   ;;  %v1627_v9 = vld [vmem:[#allocation9 + $0x170] ss:$8 sps:$4 sm:$0xff]   ;;  %v1615_v10 = vld [vmem:[#allocation9 + $0x40] ss:$8 sps:$4 sm:$0xff]  }
  0x8a   : > { %v1616_v11 = vld [vmem:[#allocation9 + $0x34] ss:$8 sps:$4 sm:$0xff]   ;;  %770 = vmatprep.subr.bf16.mxu1 %v1625_v8  ;;  %v1631_v12 = vld [vmem:[#allocation9 + $0x164] ss:$8 sps:$4 sm:$0xff]   ;;  %v1633_v13 = vld [vmem:[#allocation9 + $0x160] ss:$8 sps:$4 sm:$0xff]  }
  0x8b   : > { %771 = vmatpush1.bf16.msra.mxu1 %v1627_v9  ;;  %v1618_v14 = vld [vmem:[#allocation9 + $0x30] ss:$8 sps:$4 sm:$0xff]   ;;  %v1637_v15 = vld [vmem:[#allocation9 + $0x154] ss:$8 sps:$4 sm:$0xff]   ;;  %v1619_v16 = vld [vmem:[#allocation9 + $0x24] ss:$8 sps:$4 sm:$0xff]  }
  0x8c   : > { %723 = vmatpush1.bf16.msra.mxu0 %v1609_v4  ;;  %772 = vmatprep.subr.bf16.mxu1 %v1631_v12  ;;  %v1639_v17 = vld [vmem:[#allocation9 + $0x150] ss:$8 sps:$4 sm:$0xff]   ;;  %v1643_v18 = vld [vmem:[#allocation9 + $0x144] ss:$8 sps:$4 sm:$0xff]   ;;  %v1621_v19 = vld [vmem:[#allocation9 + $0x20] ss:$8 sps:$4 sm:$0xff]  }
  0x8d   : > { %724 = vmatprep.subr.bf16.mxu0 %v1610_v5  ;;  %v1622_v20 = vld [vmem:[#allocation9 + $0x14] ss:$8 sps:$4 sm:$0xff]   ;;  %v1645_v21 = vld [vmem:[#allocation9 + $0x140] ss:$8 sps:$4 sm:$0xff]   ;;  %v1624_v23 = vld [vmem:[#allocation9 + $0x10] ss:$8 sps:$4 sm:$0xff]  }
  0x8e   : > { %v1649_v22 = vld [vmem:[#allocation9 + $0x134] ss:$8 sps:$4 sm:$0xff]   ;;  %v1628_v24 = vld [vmem:[#allocation9 + $0x4] ss:$8 sps:$4 sm:$0xff]   ;;  %v1651_v25 = vld [vmem:[#allocation9 + $0x130] ss:$8 sps:$4 sm:$0xff]  }
  0x8f   : > { %773 = vmatpush1.bf16.msra.mxu1 %v1633_v13  ;;  %v1655_v26 = vld [vmem:[#allocation9 + $0x124] ss:$8 sps:$4 sm:$0xff]   ;;  %v1630_v27 = vld [vmem:[#allocation9] ss:$8 sps:$4 sm:$0xff]   ;;  %v1634_v28 = vld [vmem:[#allocation9 + $0xf4] ss:$8 sps:$4 sm:$0xff]  }
  0x90   : > { %725 = vmatpush1.bf16.msra.mxu0 %v1612_v6  ;;  %774 = vmatprep.subr.bf16.mxu1 %v1637_v15  ;;  %v1657_v29 = vld [vmem:[#allocation9 + $0x120] ss:$8 sps:$4 sm:$0xff]   ;;  %v1636_v31 = vld [vmem:[#allocation9 + $0xf0] ss:$8 sps:$4 sm:$0xff]   ;;  %v1661_v32 = vld [vmem:[#allocation9 + $0x114] ss:$8 sps:$4 sm:$0xff]  }
  0x91   : > { %726 = vmatprep.subr.bf16.mxu0 %v1613_v7  ;;  %v421_v34 = vrot.slane %v2222_v30, 2  ;;  %v1640_v35 = vld [vmem:[#allocation9 + $0xe4] ss:$8 sps:$4 sm:$0xff]   ;;  %v1663_v36 = vld [vmem:[#allocation9 + $0x110] ss:$8 sps:$4 sm:$0xff]   ;;  %vm420_vm0 = vcmask 1045504  }
  0x92   : > { %v1642_v37 = vld [vmem:[#allocation9 + $0xe0] ss:$8 sps:$4 sm:$0xff]   ;;  %v422_v38 = vrot.slane %v2225_v33, 2  ;;  %v1667_v39 = vld [vmem:[#allocation9 + $0x104] ss:$8 sps:$4 sm:$0xff]   ;;  %v428_v44 = vrot.slane %v2225_v33, 4 }
  0x93   : > { %775 = vmatpush1.bf16.msra.mxu1 %v1639_v17  ;;  %v1646_v40 = vld [vmem:[#allocation9 + $0xd4] ss:$8 sps:$4 sm:$0xff]   ;;  %v1669_v42 = vld [vmem:[#allocation9 + $0x100] ss:$8 sps:$4 sm:$0xff]   ;;  %v1648_v43 = vld [vmem:[#allocation9 + $0xd0] ss:$8 sps:$4 sm:$0xff]  }
  0x94   : > { %727 = vmatpush1.bf16.msra.mxu0 %v1615_v10  ;;  %776 = vmatprep.subr.bf16.mxu1 %v1643_v18  ;;  %v423_v41 = vsel %vm420_vm0, %v421_v34, %v422_v38  ;;  %v1652_v45 = vld [vmem:[#allocation9 + $0xc4] ss:$8 sps:$4 sm:$0xff]   ;;  %vm426_vm1 = vcmask 1043456   ;;  %v1677_v46 = vld [vmem:[#allocation10 + $0x78] sm:$0xff]   ;;  %v1680_v48 = vld [vmem:[#allocation10 + $0x70] sm:$0xff]   ;;  %v1936_v60 = vmov 0.0  }
  0x95   : > { %728 = vmatprep.subr.bf16.mxu0 %v1616_v11  ;;  %752 = vmatprep.mubr.bf16.mxu0 %v423_v41  ;;  %v1679_v47 = vld [vmem:[#allocation10 + $0x38] sm:$0xff]   ;;  %v1654_v49 = vld [vmem:[#allocation9 + $0xc0] ss:$8 sps:$4 sm:$0xff]   ;;  %v429_v50 = vsel %vm426_vm1, %v2222_v30, %v428_v44  ;;  %v1664_v53 = vld [vmem:[#allocation9 + $0xa4] ss:$8 sps:$4 sm:$0xff]   ;;  %vm1937_vm2 = vmmov 0  }
  0x96   : > { %v1658_v51 = vld [vmem:[#allocation9 + $0xb4] ss:$8 sps:$4 sm:$0xff]   ;;  %v1660_v52 = vld [vmem:[#allocation9 + $0xb0] ss:$8 sps:$4 sm:$0xff]   ;;  %v1666_v54 = vld [vmem:[#allocation9 + $0xa0] ss:$8 sps:$4 sm:$0xff]  }
  0x97   : > { %777 = vmatpush1.bf16.msra.mxu1 %v1645_v21  ;;  %v1670_v55 = vld [vmem:[#allocation9 + $0x94] ss:$8 sps:$4 sm:$0xff]   ;;  %v1672_v56 = vld [vmem:[#allocation9 + $0x90] ss:$8 sps:$4 sm:$0xff]   ;;  %v1674_v57 = vld [vmem:[#allocation9 + $0x84] ss:$8 sps:$4 sm:$0xff]  }
  0x98   : > { %729 = vmatpush1.bf16.msra.mxu0 %v1618_v14  ;;  %778 = vmatprep.subr.bf16.mxu1 %v1649_v22  ;;  %v1676_v58 = vld [vmem:[#allocation9 + $0x80] ss:$8 sps:$4 sm:$0xff]   ;;  %v1678_v59 = vld [vmem:[#allocation10 + $0xb8] sm:$0xff]   ;;  %v1681_v61 = vld [vmem:[#allocation10 + $0xb0] sm:$0xff]   ;;  %s2382_s16 = sld [smem:[#allocation27_spill]]  ;;  %s1426_s23 = sshll.u32 %s1917_s0, 7 }
  0x99   : > { %730 = vmatprep.subr.bf16.mxu0 %v1619_v16  ;;  %v1682_v62 = vld [vmem:[#allocation10 + $0x30] sm:$0xff]   ;;  %v1683_v63 = vld [vmem:[#allocation10 + $0x68] sm:$0xff]   ;;  %v1686_v2 = vld [vmem:[#allocation10 + $0x60] sm:$0xff]   ;;  %s2383_s7 = sld [smem:[#allocation22_spill]]  ;;  %s392_s26 = scalar_lea.vmem [#allocation12], %s1334_s1 }
  0x9a   : > { %v1685_v1 = vld [vmem:[#allocation10 + $0x28] sm:$0xff]   ;;  %v1687_v3 = vld [vmem:[#allocation10 + $0xa0] sm:$0xff]   ;;  %v1689_v5 = vld [vmem:[#allocation10 + $0x58] sm:$0xff]   ;;  %s1188_s27 = sshll.u32 %s392_s26, 4  ;;  %s2384_s3 = sld [smem:[#allocation28_spill]]  ;;  %s2265_s27 = int_to_ptr.vmem [resolvable:$true] %s1188_s27 }
  0x9b   : > { %779 = vmatpush1.bf16.msra.mxu1 %v1651_v25  ;;  %v1688_v4 = vld [vmem:[#allocation10 + $0x20] sm:$0xff]   ;;  %v1690_v6 = vld [vmem:[#allocation10 + $0x98] sm:$0xff]   ;;  %v1692_v8 = vld [vmem:[#allocation10 + $0x50] sm:$0xff]   ;;  %s1173_s24 = scalar_lea.sflag [#allocation6], %s2194_s19  ;;  %s1809_s21 = scalar_lea.vmem %s2265_s27, 128 }
  0x9c   : > { %731 = vmatpush1.bf16.msra.mxu0 %v1621_v19  ;;  %780 = vmatprep.subr.bf16.mxu1 %v1655_v26  ;;  %v1691_v7 = vld [vmem:[#allocation10 + $0x18] sm:$0xff]   ;;  %v1693_v9 = vld [vmem:[#allocation10 + $0x90] sm:$0xff]   ;;  %v1695_v11 = vld [vmem:[#allocation10 + $0x48] sm:$0xff]   ;;  %p1810_p7 = scmp.ne.s32.totalorder %s2265_s27, %s1809_s21  ;;  %s1938_s0 = smov [#allocation12]  }
  0x9d   : > { %732 = vmatprep.subr.bf16.mxu0 %v1622_v20  ;;  %v1694_v10 = vld [vmem:[#allocation10 + $0x10] sm:$0xff]   ;;  %v1696_v12 = vld [vmem:[#allocation10 + $0x88] sm:$0xff]   ;;  %v1698_v14 = vld [vmem:[#allocation10 + $0x40] sm:$0xff]   ;;  %s1813_s1 = sshll.u32 %s1938_s0, 4  ;;  %s1814_s1 = int_to_ptr.vmem [resolvable:$false] %s1813_s1 }
  0x9e   : > { %v1697_v13 = vld [vmem:[#allocation10 + $0x8] sm:$0xff]   ;;  %v1699_v15 = vld [vmem:[#allocation10 + $0x80] sm:$0xff]   ;;  %s1815_s12 = scalar_lea.vmem %s1814_s1, 256  ;;  %p1816_p12 = scmp.lt.s32.totalorder %s2265_s27, %s1814_s1 }
  0x9f   : > { %781 = vmatpush1.bf16.msra.mxu1 %v1657_v29  ;;  %v1700_v16 = vld [vmem:[#allocation10] sm:$0xff]   ;;  %p2385_p0 = scmp.ne.s32.totalorder %s2383_s7, 0  ;;  %p1817_p2 = scmp.lt.s32.totalorder %s1815_s12, %s1809_s21 }
  0xa0   : > { %733 = vmatpush1.bf16.msra.mxu0 %v1624_v23  ;;  %782 = vmatprep.subr.bf16.mxu1 %v1661_v32  ;;  %s2263_s8 = scalar_lea.hbm %s2384_s3, %s1426_s23 }
  0xa1   : > { %734 = vmatprep.subr.bf16.mxu0 %v1628_v24  ;;  %p1811_p8 = pnand %p1810_p7, %p2385_p0  ;;  %p1818_p1 = por %p1817_p2, %p1816_p12 }
  0xa3   : > { %783 = vmatpush1.bf16.msra.mxu1 %v1663_v36  ;;  %p1812_p5 = pneg %p1811_p8 }
  0xa4   : > { %735 = vmatpush1.bf16.msra.mxu0 %v1630_v27  ;;  %784 = vmatprep.subr.bf16.mxu1 %v1667_v39 }
  0xa5   : > { %736 = vmatprep.subr.bf16.mxu0 %v1634_v28  ;;  %v1389_v28 = vld [vmem:[%s2326_s4] ss:$0 sm:$0xff]  ;;  %p1819_p3 = pnand %p1818_p1, %p1812_p5 }
  0xa7   : > { %785 = vmatpush1.bf16.msra.mxu1 %v1669_v42 }
  0xa8   : > { %737 = vmatpush2.bf16.msra.mxu0 %v1636_v31  ;;  %1432 = vmatprep.subr.bf16.mxu1 %v1677_v46 }
  0xa9   : > { %738 = vmatprep.subr.bf16.mxu0 %v1640_v35 }
  0xaa   : > { %803 = vmatmul.mubr.bf16.vlgmr.msra.gmra.mxu1 %v429_v50 }
  0xab   : > { %811 = vmatprep.mubr.bf16.mxu1 %v1935_v0  ;;  %1433 = vmatpush3.bf16.msra.mxu1 %v1679_v47  ;;  %v1684_v0 = vld [vmem:[#allocation10 + $0xa8] sm:$0xff]  }
  0xac   : > { %739 = vmatpush2.bf16.msra.mxu0 %v1642_v37  ;;  %1434 = vmatprep.subr.bf16.mxu1 %v1680_v48 }
  0xad   : > { %740 = vmatprep.subr.bf16.mxu0 %v1646_v40 }
  0xaf   : > { %1435 = vmatpush3.bf16.msra.mxu1 %v1682_v62 }
  0xb0   : > { %741 = vmatpush2.bf16.msra.mxu0 %v1648_v43  ;;  %1436 = vmatprep.subr.bf16.mxu1 %v1683_v63  ;;  %v1415_v63 = vld [vmem:[%s2382_s16] ss:$0 sm:$0xff] }
  0xb1   : > { %742 = vmatprep.subr.bf16.mxu0 %v1652_v45 }
  0xb2   : > { %812 = vmatmul.mubr.bf16.gmra.mxu1 %v428_v44 }
  0xb3   : > { %1437 = vmatpush3.bf16.msra.mxu1 %v1685_v1 }
  0xb4   : > { %743 = vmatpush2.bf16.msra.mxu0 %v1654_v49  ;;  %1438 = vmatprep.subr.bf16.mxu1 %v1686_v2 }
  0xb5   : > { %744 = vmatprep.subr.bf16.mxu0 %v1658_v51 }
  0xb7   : > { %1439 = vmatpush3.bf16.msra.mxu1 %v1688_v4 }
  0xb8   : > { %745 = vmatpush2.bf16.msra.mxu0 %v1660_v52  ;;  %1440 = vmatprep.subr.bf16.mxu1 %v1689_v5 }
  0xb9   : > { %746 = vmatprep.subr.bf16.mxu0 %v1664_v53  ;;  %v1390_v53 = vld [vmem:[%s2328_s6] ss:$0 sm:$0xff] }
  0xbb   : > { %1441 = vmatpush3.bf16.msra.mxu1 %v1691_v7 }
  0xbc   : > { %747 = vmatpush2.bf16.msra.mxu0 %v1666_v54  ;;  %1442 = vmatprep.subr.bf16.mxu1 %v1692_v8 }
  0xbd   : > { %748 = vmatprep.subr.bf16.mxu0 %v1670_v55 }
  0xbf   : > { %1443 = vmatpush3.bf16.msra.mxu1 %v1694_v10 }
  0xc0   : > { %749 = vmatpush2.bf16.msra.mxu0 %v1672_v56  ;;  %1444 = vmatprep.subr.bf16.mxu1 %v1695_v11 }
  0xc1   : > { %750 = vmatprep.subr.bf16.mxu0 %v1674_v57 }
  0xc3   : > { %1445 = vmatpush3.bf16.msra.mxu1 %v1697_v13 }
  0xc4   : > { %751 = vmatpush2.bf16.msra.mxu0 %v1676_v58  ;;  %1446 = vmatprep.subr.bf16.mxu1 %v1698_v14 }
  0xc5   : > { %1463 = vmatprep.subr.bf16.mxu0 %v1936_v60 }
  0xc7   : > { %753 = vmatmul.mubr.bf16.vlgmr.msra.gmra.mxu0 %v2222_v30  ;;  %1447 = vmatpush3.bf16.msra.mxu1 %v1700_v16 }
  0xc8   : > { %761 = vmatprep.mubr.bf16.mxu0 %v422_v38  ;;  %1464 = vmatpush3.bf16.msra.mxu0 %v1678_v59 }
  0xc9   : > { %1465 = vmatprep.subr.bf16.mxu0 %v1936_v60 }
  0xcc   : > { %1466 = vmatpush3.bf16.msra.mxu0 %v1681_v61 }
  0xcd   : > { %1467 = vmatprep.subr.bf16.mxu0 %v1936_v60 }
  0xcf   : > { %762 = vmatmul.mubr.bf16.gmra.mxu0 %v2225_v33 }
  0xd0   : > { %1468 = vmatpush3.bf16.msra.mxu0 %v1684_v0  ;;  %1479 = vmatprep.mubr.msk.bf16.mxu0 %vm1937_vm2, %v1936_v60 }
  0xd1   : > { %1469 = vmatprep.subr.bf16.mxu0 %v1936_v60 }
  0xd4   : > { %1470 = vmatpush3.bf16.msra.mxu0 %v1687_v3 }
  0xd5   : > { %1471 = vmatprep.subr.bf16.mxu0 %v1936_v60 }
  0xd8   : > { %1472 = vmatpush3.bf16.msra.mxu0 %v1690_v6 }
  0xd9   : > { %1473 = vmatprep.subr.bf16.mxu0 %v1936_v60 }
  0xdc   : > { %1474 = vmatpush3.bf16.msra.mxu0 %v1693_v9 }
  0xdd   : > { %1475 = vmatprep.subr.bf16.mxu0 %v1936_v60 }
  0xe0   : > { %1476 = vmatpush3.bf16.msra.mxu0 %v1696_v12 }
  0xe1   : > { %1477 = vmatprep.subr.bf16.mxu0 %v1936_v60 }
  0xe4   : > { %1478 = vmatpush3.bf16.msra.mxu0 %v1699_v15 }
 0x16a   : > { %v804_v17 = vpop.f32.mrf.mxu1 }
 0x16c   : > { %v806_v18 = vpop.f32.mrf.mxu1 }
 0x16e   : > { %v807_v19 = vpop.f32.mrf.mxu1 }
 0x170   : > { %v809_v20 = vpop.f32.mrf.mxu1 }
 0x172   : > { %v813_v21 = vpop.f32.mrf.mxu1 }
 0x174   : > { %v815_v22 = vpop.f32.mrf.mxu1 }
 0x176   : > { %v817_v23 = vpop.f32.mrf.mxu1 }
 0x178   : > { %v818_v24 = vpop.f32.mrf.mxu1 }
 0x187   : > { %v754_v25 = vpop.f32.mrf.mxu0 }
 0x189   : > { %v756_v26 = vpop.f32.mrf.mxu0 }
 0x18b   : > { %v757_v27 = vpop.f32.mrf.mxu0 }
 0x18c   : > { %v808_v29 = vadd.f32 %v807_v19, %v757_v27 }
 0x18d   : > { %v759_v30 = vpop.f32.mrf.mxu0 }
 0x18e   : > { %v828_v31 = vadd.f32 %v1389_v28, %v808_v29  ;;  %v810_v32 = vadd.f32 %v809_v20, %v759_v30 }
 0x18f   : > { %v763_v33 = vpop.f32.mrf.mxu0 }
 0x190   : > { %v831_v34 = vmax.f32 %v828_v31, 0.0  ;;  %v814_v35 = vadd.f32 %v813_v21, %v763_v33  ;;  %v1156_v2 = vadd.f32 %v1415_v63, %v810_v32 }
 0x191   : > { %v765_v36 = vpop.f32.mrf.mxu0 }
 0x192   : > { %v829_v37 = vadd.f32 %v1389_v28, %v814_v35  ;;  %v816_v38 = vadd.f32 %v815_v22, %v765_v36  ;;  %v854_v40 = vpack.c.bf16 %v831_v34, %v1936_v60 }
 0x193   : > { %v767_v39 = vpop.f32.mrf.mxu0 }
 0x194   : > { %v832_v41 = vmax.f32 %v829_v37, 0.0  ;;  %v862_v44 = vrot.slane %v854_v40, 4  ;;  %v858_v47 = vrot.slane %v854_v40, 2  ;;  %v1157_v4 = vadd.f32 %v1415_v63, %v816_v38 }
 0x195   : > { %v768_v42 = vpop.f32.mrf.mxu0 }
 0x196   : > { %v855_v43 = vpack.c.bf16 %v832_v41, %v832_v41 }
 0x198   : > { %v859_v45 = vrot.slane %v855_v43, 2  ;;  %v863_v46 = vrot.slane %v855_v43, 4 }
 0x19a   : > { %v860_v48 = vsel %vm420_vm0, %v858_v47, %v859_v45  ;;  %v864_v49 = vsel %vm426_vm1, %v862_v44, %v863_v46 }
 0x19b   : > { %1097 = vmatprep.mubr.bf16.mxu1 %v860_v48  ;;  %1480 = vmatmul.mubr.bf16.vlgmr.msra.gmra.mxu0 %v864_v49 }
 0x19c   : > { %1098 = vmatmul.mubr.bf16.vlgmr.msra.gmra.mxu1 %v854_v40 }
 0x25b   : > { %v1140_v50 = vpop.f32.mrf.mxu0 }
 0x25c   : > { %v1448_v51 = vpop.f32.mrf.mxu1 }
 0x25d   : > { %v1481_v52 = vpop.f32.mrf.mxu0 }
 0x25e   : > { %v1449_v54 = vpop.f32.mrf.mxu1 }
 0x25f   : > { %v1450_v55 = vadd.f32 %v1449_v54, %v1448_v51  ;;  %v1143_v56 = vpop.f32.mrf.mxu0 }
 0x260   : > { %v1451_v57 = vpop.f32.mrf.mxu1 }
 0x261   : > { %v1100_v58 = vadd.f32 %v1450_v55, %v1390_v53  ;;  %v1482_v59 = vpop.f32.mrf.mxu0 }
 0x262   : > { %v1452_v60 = vpop.f32.mrf.mxu1 }
 0x263   : > { %v1141_v61 = vadd.f32 %v1140_v50, %v1100_v58  ;;  %v1453_v62 = vadd.f32 %v1452_v60, %v1451_v57 }
 0x265   : > { %v1147_v0 = vmax.f32 %v1141_v61, 0.0  ;;  %v1103_v1 = vadd.f32 %v1453_v62, %v1390_v53 }
 0x267   : > { %v1144_v3 = vadd.f32 %v1143_v56, %v1103_v1  ;;  %v1158_v5 = vadd.f32 %v1156_v2, %v1147_v0 }
 0x269   : > { %v1148_v6 = vmax.f32 %v1144_v3, 0.0  ;;  %v1160_v8 = vmax.f32 %v1158_v5, 0.0 }
 0x26b   : > { %v1159_v7 = vadd.f32 %v1157_v4, %v1148_v6 }
 0x26d   : > { %v1161_v9 = vmax.f32 %v1159_v7, 0.0 }
 0x26f   : > { %v1430_v10 = vpack.c.bf16 %v1161_v9, %v1160_v8 }
 0x271   : > { %1431 = vst [vmem:[%s392_s26] sm:$0xff] %v1430_v10  }
 0x272   : > { %1822 = shalt.err (!%p1819_p3)
}
 0x273   : > { %s1823_s20 = scalar_lea.hbm %s2263_s8, 128  ;;  %s1827_s18 = scalar_lea.hbm %s2384_s3, 256 }
 0x274   : > { %p1824_p4 = scmp.ne.s32.totalorder %s2263_s8, %s1823_s20  ;;  %p1828_p11 = scmp.lt.s32.totalorder %s2263_s8, %s2384_s3 }
 0x275   : > { %p1829_p6 = scmp.lt.s32.totalorder %s1827_s18, %s1823_s20 }
 0x276   : > { %p1825_p10 = pnand %p1824_p4, %p2385_p0 }
 0x277   : > { %p1830_p13 = por %p1829_p6, %p1828_p11 }
 0x278   : > { %p1826_p9 = pneg %p1825_p10 }
 0x27a   : > { %p1831_p7 = pnand %p1830_p13, %p1826_p9 }
 0x27c   : > { %1834 = shalt.err (!%p1831_p7)
}
 0x27d   : > { %s1939_s25 = smov 64   ;;  %s1940_s16 = smov 4  }
 0x27e   : > { %1495 = dma.vmem_to_hbm [thread:$0]  (%p2385_p0), %s2265_s27, 128, %s2263_s8, %s1173_s24, %s1939_s25, %s1939_s25, %s1940_s16  }
 0x27f PF: > { %s2386_s23 = sld [smem:[#allocation18_spill]]  ;;  %p2389_p5 = scmp.ge.s32.totalorder %s1925_s14, 2 }
 0x280   : > { %s2387_s26 = sld [smem:[#allocation20_spill]] }
 0x285   : > { %s1203_s28 = sand.u32 1, %s2386_s23  }
 0x286   : > { %p2388_p8 = scmp.ne.s32.totalorder %s2387_s26, 0  ;;  %s1204_s29 = scalar_lea.sflag [#allocation6], %s1203_s28 }
 0x288   : > { %p1512_p12 = pnand %p2389_p5, %p2388_p8 }
 0x28a   : > { %p1513_p2 = pneg %p1512_p12 }
 0x28c   : > { %1888 = dma.done.wait (%p1513_p2), %s1204_s29, 128  }
 0x28d   : > { %1890 = vsyncadd (%p1513_p2), %s1204_s29, 4294967168  ;;  %s29_s14 = sadd.s32 1, %s1925_s14   ;;  %s2390_s19 = sld [smem:[#allocation19_spill]] }
 0x28e   : > { %p26_p1 = scmp.ge.s32.totalorder %s29_s14, 4   ;;  %s2391_s12 = sld [smem:[#allocation23_spill]] }
 0x28f   : > { %s2392_s7 = sld [smem:[#allocation21_spill]]  ;;  %s2393_s29 = smov %s1897_s30 }
 0x290   : > { %s2394_s30 = smov %s1901_s9  ;;  %s2395_s9 = smov %s2146_s22 }
 0x291   : > { %s2396_s10 = smov %s1909_s11  ;;  %s2398_s0 = smov %s1921_s13 }
 0x292   :  { %28 = sbr.rel (!%p26_p1) target bundleno = 18 (0x12), region = 114 }
 0x293   : > { %s2397_s11 = smov %s2390_s19 }
 0x295   : > { %s2399_s13 = smov %s2392_s7 }
 0x297   :  { %1209 = vsyncpa [#allocation5], 1 }
 0x298   :  { %1211 = vsyncpa [#allocation5 + $0x1], 1 }
 0x299   :  { %1212 = vsyncpa [#allocation8], 1 }
 0x29a   :  { %1214 = vsyncpa [#allocation8 + $0x1], 1 }
 0x29b   :  { %1215 = vsyncpa [#allocation11], 1 }
 0x29c   :  { %1216 = vsyncpa [#allocation6], 1 }
 0x29d   :  { %1218 = vsyncpa [#allocation6 + $0x1], 1 }

</bundles_post_ra>
